<compile_context>
chip_gen: v6e
topology: v6e:2x2x1
jax: 0.10.0
libtpu: 0.0.40
codegen_flags: <defaults>
</compile_context>

<pallas_src>
import jax
import jax.numpy as jnp
from jax import lax
from jax.experimental import pallas as pl
from jax.experimental.pallas import tpu as pltpu


def _gated_conv_kernel(x_ref, t_ref, b_ref, o_ref):
    # x_ref : (1, H, W*C)     f32   input, (W, C) flattened on the lane axis
    # t_ref : (3, W*C, W*C)   bf16  banded conv weights, one slab per kernel row dy
    # b_ref : (1, W*C)        f32   bias tiled over W
    # o_ref : (1, H, W*C)     f32
    H = x_ref.shape[1]
    WC = x_ref.shape[2]

    x = x_ref[0]                                              # (H, W*C), f32

    # Rows shifted by +-1 with zero fill == zero padding along H (in registers).
    zrow = jnp.zeros((1, WC), jnp.float32)
    x_up = jnp.concatenate([zrow, x[:H - 1, :]], axis=0)      # row h -> x[h-1]
    x_dn = jnp.concatenate([x[1:, :], zrow], axis=0)          # row h -> x[h+1]

    # One (H, W*C) x (W*C, W*C) contraction per kernel row; f32 accumulation.
    acc = jnp.dot(x_up.astype(jnp.bfloat16), t_ref[0],
                  preferred_element_type=jnp.float32)
    acc = acc + jnp.dot(x.astype(jnp.bfloat16), t_ref[1],
                        preferred_element_type=jnp.float32)
    acc = acc + jnp.dot(x_dn.astype(jnp.bfloat16), t_ref[2],
                        preferred_element_type=jnp.float32)
    acc = acc + b_ref[...]                                    # (1, W*C) bcast over H

    gate = 1.0 / (1.0 + jnp.exp(-x))                          # sigmoid(x), f32 (EUP)
    o_ref[0] = (acc * gate).astype(o_ref.dtype)


def _banded_conv_weights(w_oihw, W):
    """(Cout, Cin, 3, 3) -> (3, W*Cin, W*Cout) banded matrices.

    T[dy][wi*Cin + ci, w*Cout + co] = w[co, ci, dy, wi - w + 1]
    Taps that would fall outside [0, W) are dropped, which is exactly the
    zero padding of width 1 along W.
    """
    Cout, Cin, KH, KW = w_oihw.shape
    mats = []
    for dy in range(KH):
        t = jnp.zeros((W * Cin, W * Cout), jnp.float32)
        for dx in range(KW):
            band = jnp.eye(W, W, k=1 - dx, dtype=jnp.float32)      # [wi, w]
            tap = w_oihw[:, :, dy, dx].T.astype(jnp.float32)       # (Cin, Cout)
            blk = jnp.einsum("wv,io->wivo", band, tap)             # (W,Cin,W,Cout)
            t = t + blk.reshape(W * Cin, W * Cout)
        mats.append(t)
    return jnp.stack(mats)                                          # (3, W*Cin, W*Cout)


@jax.jit
def gated_conv(x_nchw, w, b):
    """GatedConv forward: conv2d(x, w, b, padding=1) * sigmoid(x).

    x_nchw: (N, C, H, W); w: (Cout, Cin, 3, 3); b: (Cout,).
    Requires Cin == Cout (needed by the elementwise gate, as in the module).
    """
    N, Cin, H, W = x_nchw.shape
    Cout = w.shape[0]
    assert Cin == Cout, "gate product requires in_channels == out_channels"
    C = Cin
    WC = W * C

    # NCHW -> (N, H, W*C): channels-last, (W, C) flattened onto the lane axis.
    x2d = jnp.transpose(x_nchw, (0, 2, 3, 1)).reshape(N, H, WC).astype(jnp.float32)

    t_banded = _banded_conv_weights(w, W).astype(jnp.bfloat16)      # (3, WC, WC)
    bias_row = jnp.tile(b.astype(jnp.float32), W).reshape(1, WC)    # (1, WC)

    out2d = pl.pallas_call(
        _gated_conv_kernel,
        out_shape=jax.ShapeDtypeStruct((N, H, WC), jnp.float32),
        grid_spec=pltpu.PrefetchScalarGridSpec(
            num_scalar_prefetch=0,
            grid=(N,),
            in_specs=[
                pl.BlockSpec((1, H, WC), lambda n: (n, 0, 0)),
                pl.BlockSpec((3, WC, WC), lambda n: (0, 0, 0)),
                pl.BlockSpec((1, WC), lambda n: (0, 0)),
            ],
            out_specs=pl.BlockSpec((1, H, WC), lambda n: (n, 0, 0)),
        ),
        compiler_params=pltpu.CompilerParams(
            dimension_semantics=("parallel",)),
    )(x2d, t_banded, bias_row)

    # (N, H, W*C) -> NCHW to match the PyTorch output convention.
    return jnp.transpose(out2d.reshape(N, H, W, Cout), (0, 3, 1, 2))


def _reference(x_nchw, w, b):
    """Pure-JAX GatedConv reference (bf16 conv inputs / f32 accum, matching the kernel)."""
    dn = lax.conv_dimension_numbers(x_nchw.shape, w.shape, ("NCHW", "OIHW", "NCHW"))
    conv = lax.conv_general_dilated(
        x_nchw.astype(jnp.bfloat16), w.astype(jnp.bfloat16),
        window_strides=(1, 1), padding=((1, 1), (1, 1)),
        dimension_numbers=dn, preferred_element_type=jnp.float32)
    conv = conv + b.astype(jnp.float32)[None, :, None, None]
    return conv * jax.nn.sigmoid(x_nchw.astype(jnp.float32))


if __name__ == "__main__":
    key = jax.random.PRNGKey(0)
    N, C, H, W = 2, 4, 16, 16  # in_channels == out_channels == 4

    k_x, k_w, k_b = jax.random.split(key, 3)
    x = jax.random.normal(k_x, (N, C, H, W), dtype=jnp.float32)
    w = jax.random.normal(k_w, (C, C, 3, 3), dtype=jnp.float32) * 0.1
    b = jax.random.normal(k_b, (C,), dtype=jnp.float32) * 0.1

    out = jax.block_until_ready(gated_conv(x, w, b))
    ref = jax.block_until_ready(_reference(x, w, b))

    assert out.shape == (N, C, H, W)
    assert jnp.allclose(out, ref, atol=1e-4, rtol=1e-4), \
        float(jnp.max(jnp.abs(out - ref)))

    print("KERNEL_OK")
</pallas_src>

<mosaic_0001>
module attributes {stable_mosaic.version = 11 : i64} {
  func.func @_gated_conv_kernel(%arg0: i32, %arg1: memref<1x16x64xf32, #tpu.memory_space<vmem>>, %arg2: memref<3x64x64xbf16, #tpu.memory_space<vmem>>, %arg3: memref<1x64xf32, #tpu.memory_space<vmem>>, %arg4: memref<1x16x64xf32, #tpu.memory_space<vmem>>) attributes {dimension_semantics = [#tpu.dimension_semantics<parallel>], iteration_bounds = array<i64: 2>, scalar_prefetch = 0 : i64, scratch_operands = 0 : i64, tpu.core_type = #tpu.core_type<tc>, window_params = [{transform_indices = @transform_0, window_bounds = array<i64: 1, 16, 64>}, {pipeline_mode = #tpu.pipeline_mode<synchronous>, transform_indices = @transform_1, window_bounds = array<i64: 3, 64, 64>}, {pipeline_mode = #tpu.pipeline_mode<synchronous>, transform_indices = @transform_2, window_bounds = array<i64: 1, 64>}, {transform_indices = @transform_3, window_bounds = array<i64: 1, 16, 64>}]} {
    %c0 = arith.constant 0 : index
    %c0_0 = arith.constant 0 : index
    %c0_1 = arith.constant 0 : index
    %0 = vector.load %arg1[%c0, %c0_0, %c0_1] : memref<1x16x64xf32, #tpu.memory_space<vmem>>, vector<1x16x64xf32>
    %1 = vector.shape_cast %0 : vector<1x16x64xf32> to vector<16x64xf32>
    %cst = arith.constant 0.000000e+00 : f32
    %2 = vector.broadcast %cst : f32 to vector<1x64xf32>
    %3 = vector.extract_strided_slice %1 {offsets = [0, 0], sizes = [15, 64], strides = [1, 1]} : vector<16x64xf32> to vector<15x64xf32>
    %4 = tpu.concatenate %2, %3 in 0 : vector<1x64xf32>, vector<15x64xf32> -> vector<16x64xf32>
    %5 = vector.extract_strided_slice %1 {offsets = [1, 0], sizes = [15, 64], strides = [1, 1]} : vector<16x64xf32> to vector<15x64xf32>
    %6 = tpu.concatenate %5, %2 in 0 : vector<15x64xf32>, vector<1x64xf32> -> vector<16x64xf32>
    %7 = arith.truncf %4 : vector<16x64xf32> to vector<16x64xbf16>
    %c0_2 = arith.constant 0 : index
    %c0_3 = arith.constant 0 : index
    %c0_4 = arith.constant 0 : index
    %8 = vector.load %arg2[%c0_2, %c0_3, %c0_4] : memref<3x64x64xbf16, #tpu.memory_space<vmem>>, vector<1x64x64xbf16>
    %9 = vector.shape_cast %8 : vector<1x64x64xbf16> to vector<64x64xbf16>
    %cst_5 = arith.constant dense<0.000000e+00> : vector<16x64xf32>
    %10 = tpu.matmul %7, %9, %cst_5 {dimension_numbers = #tpu.dot_dimension_numbers<[1], [0], [0], [1], [0, 0, 1, 1], [], []>} : vector<16x64xbf16>, vector<64x64xbf16>, vector<16x64xf32> -> vector<16x64xf32>
    %11 = arith.truncf %1 : vector<16x64xf32> to vector<16x64xbf16>
    %c1 = arith.constant 1 : index
    %c0_6 = arith.constant 0 : index
    %c0_7 = arith.constant 0 : index
    %12 = vector.load %arg2[%c1, %c0_6, %c0_7] : memref<3x64x64xbf16, #tpu.memory_space<vmem>>, vector<1x64x64xbf16>
    %13 = vector.shape_cast %12 : vector<1x64x64xbf16> to vector<64x64xbf16>
    %cst_8 = arith.constant dense<0.000000e+00> : vector<16x64xf32>
    %14 = tpu.matmul %11, %13, %cst_8 {dimension_numbers = #tpu.dot_dimension_numbers<[1], [0], [0], [1], [0, 0, 1, 1], [], []>} : vector<16x64xbf16>, vector<64x64xbf16>, vector<16x64xf32> -> vector<16x64xf32>
    %15 = arith.addf %10, %14 : vector<16x64xf32>
    %16 = arith.truncf %6 : vector<16x64xf32> to vector<16x64xbf16>
    %c2 = arith.constant 2 : index
    %c0_9 = arith.constant 0 : index
    %c0_10 = arith.constant 0 : index
    %17 = vector.load %arg2[%c2, %c0_9, %c0_10] : memref<3x64x64xbf16, #tpu.memory_space<vmem>>, vector<1x64x64xbf16>
    %18 = vector.shape_cast %17 : vector<1x64x64xbf16> to vector<64x64xbf16>
    %cst_11 = arith.constant dense<0.000000e+00> : vector<16x64xf32>
    %19 = tpu.matmul %16, %18, %cst_11 {dimension_numbers = #tpu.dot_dimension_numbers<[1], [0], [0], [1], [0, 0, 1, 1], [], []>} : vector<16x64xbf16>, vector<64x64xbf16>, vector<16x64xf32> -> vector<16x64xf32>
    %20 = arith.addf %15, %19 : vector<16x64xf32>
    %c0_12 = arith.constant 0 : index
    %c0_13 = arith.constant 0 : index
    %21 = vector.load %arg3[%c0_12, %c0_13] : memref<1x64xf32, #tpu.memory_space<vmem>>, vector<1x64xf32>
    %22 = vector.broadcast %21 : vector<1x64xf32> to vector<16x64xf32>
    %23 = arith.addf %20, %22 : vector<16x64xf32>
    %cst_14 = arith.constant 0.000000e+00 : f32
    %24 = vector.broadcast %cst_14 : f32 to vector<16x64xf32>
    %25 = arith.subf %24, %1 : vector<16x64xf32>
    %26 = math.exp %25 : vector<16x64xf32>
    %cst_15 = arith.constant 1.000000e+00 : f32
    %27 = vector.broadcast %cst_15 : f32 to vector<16x64xf32>
    %28 = arith.addf %27, %26 : vector<16x64xf32>
    %cst_16 = arith.constant 1.000000e+00 : f32
    %29 = vector.broadcast %cst_16 : f32 to vector<16x64xf32>
    %30 = arith.divf %29, %28 : vector<16x64xf32>
    %31 = arith.mulf %23, %30 : vector<16x64xf32>
    %c0_17 = arith.constant 0 : index
    %c0_18 = arith.constant 0 : index
    %c0_19 = arith.constant 0 : index
    %32 = vector.load %arg4[%c0_17, %c0_18, %c0_19] : memref<1x16x64xf32, #tpu.memory_space<vmem>>, vector<1x16x64xf32>
    %33 = vector.shape_cast %32 : vector<1x16x64xf32> to vector<16x64xf32>
    %34 = vector.shape_cast %31 : vector<16x64xf32> to vector<1x16x64xf32>
    tpu.vector_store %arg4[%c0_17, %c0_18, %c0_19], %34 {strides = array<i32>} : memref<1x16x64xf32, #tpu.memory_space<vmem>>, vector<1x16x64xf32>,
    return
  }
  func.func @transform_0(%arg0: i32) -> (i32, i32, i32) {
    %c0_i32 = arith.constant 0 : i32
    %c0_i32_0 = arith.constant 0 : i32
    %c0_i32_1 = arith.constant 0 : i32
    return %arg0, %c0_i32, %c0_i32_0 : i32, i32, i32
  }
  func.func @transform_1(%arg0: i32) -> (i32, i32, i32) {
    %c0_i32 = arith.constant 0 : i32
    %c0_i32_0 = arith.constant 0 : i32
    %c0_i32_1 = arith.constant 0 : i32
    %c0_i32_2 = arith.constant 0 : i32
    return %c0_i32, %c0_i32_0, %c0_i32_1 : i32, i32, i32
  }
  func.func @transform_2(%arg0: i32) -> (i32, i32) {
    %c0_i32 = arith.constant 0 : i32
    %c0_i32_0 = arith.constant 0 : i32
    %c0_i32_1 = arith.constant 0 : i32
    return %c0_i32, %c0_i32_0 : i32, i32
  }
  func.func @transform_3(%arg0: i32) -> (i32, i32, i32) {
    %c0_i32 = arith.constant 0 : i32
    %c0_i32_0 = arith.constant 0 : i32
    %c0_i32_1 = arith.constant 0 : i32
    return %arg0, %c0_i32, %c0_i32_0 : i32, i32, i32
  }
}

</mosaic_0001>

<bundles_post_ra>
// kernel: tile.8
= control target key start
LH: loop header
LB: loop body
LE: loop exit
PB: predicated region body
PF: predicated region fallthrough
CT: control target
= control target key end

     0   :  { %s28_s0 = inlined_call_operand.vmem [shape: f32[4], index: 0, kind: input, shape index: {}]   ;;  %s29_s1 = inlined_call_operand.vmem [shape: f32[16,4], index: 1, kind: output, shape index: {}]  }
   0x1   :  { %v4_v0 = vld [vmem:[%s28_s0] ss:$0 sm:$0xff] }
   0x2   :  { %5 = vst [vmem:[%s29_s1] sm:$0xff] %v4_v0  ;;  %8 = vst [vmem:[%s29_s1 + $0x8] sm:$0xff] %v4_v0 }

// kernel: tile.9
= control target key start
LH: loop header
LB: loop body
LE: loop exit
PB: predicated region body
PF: predicated region fallthrough
CT: control target
= control target key end

     0   :  { %s133_s10 = smov 60   ;;  %s134_s11 = smov 52   ;;  %vm3_vm0 = vcmask 31744   ;;  %vm9_vm1 = vcmask 523744   ;;  %vm15_vm2 = vcmask 490944   ;;  %vm21_vm3 = vcmask 458144   ;;  %s209_s0 = inlined_call_operand.vmem [shape: f32[16,4], index: 0, kind: input, shape index: {}]   ;;  %s210_s1 = inlined_call_operand.vmem [shape: f32[1,64], index: 1, kind: output, shape index: {}]  }
   0x1   :  { %v103_v0 = vld [vmem:[%s209_s0 + $0xf] sm:$0x1]   ;;  %v105_v1 = vld [vmem:[%s209_s0 + $0xd] sm:$0x1]   ;;  %v104_v2 = vld [vmem:[%s209_s0 + $0xe] sm:$0x1]  }
   0x2   :  { %7 = vrot.lane.b32.xlu0 %v103_v0, %s133_s10  ;;  %19 = vrot.lane.b32.xlu1 %v105_v1, %s134_s11  ;;  %v106_v3 = vld [vmem:[%s209_s0 + $0xc] sm:$0x1]   ;;  %s135_s16 = smov 56   ;;  %s136_s17 = smov 48   ;;  %v107_v4 = vld [vmem:[%s209_s0 + $0xb] sm:$0x1]  }
   0x3   :  { %v108_v5 = vld [vmem:[%s209_s0 + $0xa] sm:$0x1]   ;;  %v2_v6 = vld [vmem:[%s209_s0] sm:$0x1]   ;;  %s137_s24 = smov 44   ;;  %s138_s25 = smov 40  }
   0x4   :  { %4 = vst.msk [vmem:[#allocation0] sm:$0x1] %vm3_vm0, %v2_v6   ;;  %v109_v7 = vld [vmem:[%s209_s0 + $0x9] sm:$0x1]   ;;  %v110_v8 = vld [vmem:[%s209_s0 + $0x8] sm:$0x1]  }
   0x5   :  { %s139_s30 = smov 36   ;;  %s140_s2 = smov 32   ;;  %v111_v9 = vld [vmem:[%s209_s0 + $0x7] sm:$0x1]   ;;  %v112_v10 = vld [vmem:[%s209_s0 + $0x6] sm:$0x1]  }
   0x6   :  { %13 = vrot.lane.b32.xlu0 %v104_v2, %s135_s16  ;;  %25 = vrot.lane.b32.xlu1 %v106_v3, %s136_s17  ;;  %s141_s7 = smov 28   ;;  %s142_s8 = smov 24   ;;  %v113_v11 = vld [vmem:[%s209_s0 + $0x5] sm:$0x1]   ;;  %v114_v12 = vld [vmem:[%s209_s0 + $0x4] sm:$0x1]  }
   0x7   :  { %s143_s13 = smov 20   ;;  %s144_s14 = smov 16   ;;  %v115_v13 = vld [vmem:[%s209_s0 + $0x3] sm:$0x1]   ;;  %v116_v14 = vld [vmem:[%s209_s0 + $0x2] sm:$0x1]  }
   0x8   :  { %s145_s19 = smov 12   ;;  %s146_s20 = smov 8   ;;  %v117_v15 = vld [vmem:[%s209_s0 + $0x1] sm:$0x1]   ;;  %vm27_vm4 = vcmask 425344   ;;  %vm33_vm5 = vcmask 392544  }
   0x9   :  { %s147_s0 = smov 4   ;;  %vm39_vm6 = vcmask 359744   ;;  %vm45_vm7 = vcmask 326944   ;;  %vm51_vm8 = vcmask 294144   ;;  %vm57_vm9 = vcmask 261344  }
   0xa   :  { %31 = vrot.lane.b32.xlu0 %v107_v4, %s137_s24  ;;  %37 = vrot.lane.b32.xlu1 %v108_v5, %s138_s25  ;;  %vm63_vm10 = vcmask 228544   ;;  %vm69_vm11 = vcmask 195744   ;;  %vm75_vm12 = vcmask 162944   ;;  %vm81_vm13 = vcmask 130144  }
   0xb   :  { %vm87_vm14 = vcmask 97344   ;;  %vm93_vm15 = vcmask 64544  }
   0xe   :  { %43 = vrot.lane.b32.xlu0 %v109_v7, %s139_s30  ;;  %49 = vrot.lane.b32.xlu1 %v110_v8, %s140_s2 }
  0x12   :  { %55 = vrot.lane.b32.xlu0 %v111_v9, %s141_s7  ;;  %61 = vrot.lane.b32.xlu1 %v112_v10, %s142_s8 }
  0x16   :  { %67 = vrot.lane.b32.xlu0 %v113_v11, %s143_s13  ;;  %73 = vrot.lane.b32.xlu1 %v114_v12, %s144_s14 }
  0x1a   :  { %79 = vrot.lane.b32.xlu0 %v115_v13, %s145_s19  ;;  %85 = vrot.lane.b32.xlu1 %v116_v14, %s146_s20 }
  0x1e   :  { %91 = vrot.lane.b32.xlu0 %v117_v15, %s147_s0 }
  0x74   :  { %v8_v16 = vpop.permute.xlu0 %7   ;;  %v20_v17 = vpop.permute.xlu1 %19  }
  0x75   :  { %10 = vst.msk [vmem:[#allocation0] sm:$0x1] %vm9_vm1, %v8_v16  }
  0x78   :  { %v14_v18 = vpop.permute.xlu0 %13   ;;  %v26_v19 = vpop.permute.xlu1 %25  }
  0x79   :  { %16 = vst.msk [vmem:[#allocation0] sm:$0x1] %vm15_vm2, %v14_v18  }
  0x7a   :  { %22 = vst.msk [vmem:[#allocation0] sm:$0x1] %vm21_vm3, %v20_v17  }
  0x7b   :  { %28 = vst.msk [vmem:[#allocation0] sm:$0x1] %vm27_vm4, %v26_v19  }
  0x7c   :  { %v32_v20 = vpop.permute.xlu0 %31   ;;  %v38_v21 = vpop.permute.xlu1 %37  }
  0x7d   :  { %34 = vst.msk [vmem:[#allocation0] sm:$0x1] %vm33_vm5, %v32_v20  }
  0x7e   :  { %40 = vst.msk [vmem:[#allocation0] sm:$0x1] %vm39_vm6, %v38_v21  }
  0x80   :  { %v44_v22 = vpop.permute.xlu0 %43   ;;  %v50_v23 = vpop.permute.xlu1 %49  }
  0x81   :  { %46 = vst.msk [vmem:[#allocation0] sm:$0x1] %vm45_vm7, %v44_v22  }
  0x82   :  { %52 = vst.msk [vmem:[#allocation0] sm:$0x1] %vm51_vm8, %v50_v23  }
  0x84   :  { %v56_v24 = vpop.permute.xlu0 %55   ;;  %v62_v25 = vpop.permute.xlu1 %61  }
  0x85   :  { %58 = vst.msk [vmem:[#allocation0] sm:$0x1] %vm57_vm9, %v56_v24  }
  0x86   :  { %64 = vst.msk [vmem:[#allocation0] sm:$0x1] %vm63_vm10, %v62_v25  }
  0x88   :  { %v68_v26 = vpop.permute.xlu0 %67   ;;  %v74_v27 = vpop.permute.xlu1 %73  }
  0x89   :  { %70 = vst.msk [vmem:[#allocation0] sm:$0x1] %vm69_vm11, %v68_v26  }
  0x8a   :  { %76 = vst.msk [vmem:[#allocation0] sm:$0x1] %vm75_vm12, %v74_v27  }
  0x8c   :  { %v80_v28 = vpop.permute.xlu0 %79   ;;  %v86_v29 = vpop.permute.xlu1 %85  }
  0x8d   :  { %82 = vst.msk [vmem:[#allocation0] sm:$0x1] %vm81_vm13, %v80_v28  }
  0x8e   :  { %88 = vst.msk [vmem:[#allocation0] sm:$0x1] %vm87_vm14, %v86_v29  }
  0x90   :  { %v92_v30 = vpop.permute.xlu0 %91  }
  0x91   :  { %94 = vst.msk [vmem:[#allocation0] sm:$0x1] %vm93_vm15, %v92_v30  }
  0x98   :  { %v99_v31 = vld [vmem:[#allocation0] sm:$0x1] }
  0x99   :  { %102 = vst [vmem:[%s210_s1] sm:$0x1] %v99_v31 }

// kernel: gated_conv.1
= control target key start
LH: loop header
LB: loop body
LE: loop exit
PB: predicated region body
PF: predicated region fallthrough
CT: control target
= control target key end

     0   :  { %s662_s12 = smov 0   ;;  %s733_s0 = inlined_call_operand.vmem [shape: f32[2,16,64], index: 0, kind: input, shape index: {}]   ;;  %s734_s1 = inlined_call_operand.vmem [shape: bf16[3,64,64], index: 1, kind: input, shape index: {}]   ;;  %s735_s2 = inlined_call_operand.vmem [shape: f32[1,64], index: 2, kind: input, shape index: {}]   ;;  %s736_s3 = inlined_call_operand.vmem [shape: f32[2,16,64], index: 3, kind: output, shape index: {}]  }
   0x1 LB: > { %s506_s13 = sadd.s32 4294967295, %s638_s12   ;;  %p510_p0 = scmp.ge.s32.totalorder %s638_s12, 1  ;;  %s638_s12 = sphi %s662_s12, %s13_s12  }
   0x2   : > { %p137_p1 = scmp.lt.s32.totalorder %s638_s12, 3 }
   0x4   : > { %p138_p2 = pnand %p510_p0, %p137_p1 }
   0x5   : > { %p161_p3 = scmp.lt.s32.totalorder (!%p138_p2), %s506_s13, 1 }
   0x6   : > { %141 = sbr.rel (%p138_p2) target bundleno = 248 (0xf8), region = 32 }
   0xb   : > { %v612_v0 = vld [vmem:[%s734_s1 + $0x38] sm:$0xff]   ;;  %v640_v1 = vmov 0.0   ;;  %v614_v3 = vld [vmem:[%s734_s1 + $0x30] sm:$0xff]   ;;  %vm641_vm0 = vmmov 0   ;;  %s738_s13 = smov (!%p161_p3, %s506_s13), 1  ;;  %v616_v5 = vld [vmem:[%s734_s1 + $0x28] sm:$0xff]  }
   0xc   : > { %566 = vmatprep.subr.bf16.mxu0 %v640_v1  ;;  %578 = vmatprep.subr.bf16.mxu1 %v640_v1  ;;  %v613_v2 = vld [vmem:[%s734_s1 + $0x18] sm:$0xff]   ;;  %v615_v4 = vld [vmem:[%s734_s1 + $0x10] sm:$0xff]   ;;  %s549_s24 = sshll.u32 %s738_s13, 4  ;;  %v617_v6 = vld [vmem:[%s734_s1 + $0x8] sm:$0xff]   ;;  %vm176_vm1 = vcmask 1040384   ;;  %vm233_vm2 = vcmask 523264  }
   0xd   : > { %567 = vmatpush3.bf16.msra.mxu0 %v612_v0  ;;  %574 = vmatprep.mubr.msk.bf16.mxu0 %vm641_vm0, %v640_v1  ;;  %s165_s29 = scalar_lea.vmem %s733_s0, %s549_s24  ;;  %v618_v9 = vld [vmem:[%s734_s1 + $0x20] sm:$0xff]   ;;  %v620_v17 = vld [vmem:[%s734_s1 + $0x58] sm:$0xff]   ;;  %v621_v18 = vld [vmem:[%s734_s1 + $0x50] sm:$0xff]   ;;  %vm183_vm3 = vcmask 1046528   ;;  %s170_s21 = scalar_lea.vmem %s736_s3, %s549_s24 }
   0xe   : > { %579 = vmatpush3.bf16.msra.mxu1 %v613_v2  ;;  %568 = vmatprep.subr.bf16.mxu0 %v640_v1  ;;  %v172_v7 = vld [vmem:[%s165_s29] sm:$0xff]  ;;  %v173_v8 = vld [vmem:[%s165_s29 + $0x8] sm:$0xff] }
   0xf   : > { %580 = vmatprep.subr.bf16.mxu1 %v640_v1  ;;  %586 = vmatprep.mubr.msk.bf16.mxu1 %vm641_vm0, %v640_v1  ;;  %v177_v10 = vrot.slane %v172_v7, 7  ;;  %v178_v11 = vrot.slane %v173_v8, 7  ;;  %v619_v12 = vld [vmem:[%s734_s1] sm:$0xff]   ;;  %v199_v15 = vpack.c.bf16 %v173_v8, %v172_v7  ;;  %v184_v19 = vrot.slane %v172_v7, 1  ;;  %v622_v20 = vld [vmem:[%s734_s1 + $0x48] sm:$0xff]  }
  0x10   : > { %v185_v21 = vrot.slane %v173_v8, 1  ;;  %v623_v22 = vld [vmem:[%s734_s1 + $0x40] sm:$0xff]   ;;  %v435_v26 = vsub.f32 0.0, %v172_v7  ;;  %v436_v27 = vsub.f32 0.0, %v173_v8 }
  0x11   : > { %569 = vmatpush3.bf16.msra.mxu0 %v614_v3  ;;  %v179_v13 = vsel %vm176_vm1, %v177_v10, %v178_v11  ;;  %v182_v14 = vsel %vm176_vm1, 0.0, %v177_v10  ;;  %v546_v44 = vld [vmem:[%s735_s2] ss:$0 sm:$0xff] }
  0x12   : > { %581 = vmatpush3.bf16.msra.mxu1 %v615_v4  ;;  %570 = vmatprep.subr.bf16.mxu0 %v640_v1  ;;  %v190_v16 = vpack.c.bf16 %v179_v13, %v182_v14  ;;  %v186_v23 = vsel %vm183_vm3, %v184_v19, %v185_v21  ;;  %v189_v24 = vsel %vm183_vm3, %v185_v21, 0.0  ;;  %v437_v28 = vmul.f32 1.442695, %v435_v26 }
  0x13   : > { %582 = vmatprep.subr.bf16.mxu1 %v640_v1  ;;  %v346_v25 = vpack.c.bf16 %v189_v24, %v186_v23  ;;  %v439_v29 = vmul.f32 1.442695, %v436_v27 }
  0x14   : > { %624 = vpow2.f32 %v437_v28 }
  0x15   : > { %571 = vmatpush3.bf16.msra.mxu0 %v616_v5  ;;  %626 = vpow2.f32 %v439_v29 }
  0x16   : > { %583 = vmatpush3.bf16.msra.mxu1 %v617_v6  ;;  %572 = vmatprep.subr.bf16.mxu0 %v640_v1 }
  0x17   : > { %584 = vmatprep.subr.bf16.mxu1 %v640_v1 }
  0x19   : > { %573 = vmatpush3.bf16.msra.mxu0 %v618_v9 }
  0x1a   : > { %585 = vmatpush3.bf16.msra.mxu1 %v619_v12  ;;  %590 = vmatprep.subr.bf16.mxu0 %v640_v1 }
  0x1c   : > { %575 = vmatmul.mubr.msk.bf16.vlgmr.msra.gmra.mxu0 %vm233_vm2, %v199_v15 }
  0x1d   : > { %587 = vmatmul.mubr.msk.bf16.vlgmr.msra.gmra.mxu1 %vm233_vm2, %v190_v16  ;;  %591 = vmatpush3.bf16.msra.mxu0 %v620_v17 }
  0x1e   : > { %592 = vmatprep.subr.bf16.mxu0 %v640_v1  ;;  %598 = vmatprep.mubr.msk.bf16.mxu0 %vm641_vm0, %v640_v1 }
  0x21   : > { %593 = vmatpush3.bf16.msra.mxu0 %v621_v18  ;;  %v625_v30 = vpop.eup %624 }
  0x22   : > { %594 = vmatprep.subr.bf16.mxu0 %v640_v1  ;;  %v441_v33 = vadd.f32 1.0, %v625_v30  ;;  %v627_v34 = vpop.eup %626 }
  0x23   : > { %v442_v39 = vadd.f32 1.0, %v627_v34 }
  0x24   : > { %628 = vrcp.f32 %v441_v33 }
  0x25   : > { %595 = vmatpush3.bf16.msra.mxu0 %v622_v20  ;;  %630 = vrcp.f32 %v442_v39 }
  0x26   : > { %596 = vmatprep.subr.bf16.mxu0 %v640_v1 }
  0x29   : > { %597 = vmatpush3.bf16.msra.mxu0 %v623_v22 }
  0x2c   : > { %599 = vmatmul.mubr.msk.bf16.vlgmr.msra.gmra.mxu0 %vm233_vm2, %v346_v25 }
  0x31   : > { %v629_v46 = vpop.eup %628 }
  0x32   : > { %v631_v53 = vpop.eup %630 }
  0xdc   : > { %v271_v31 = vpop.f32.mrf.mxu0 }
  0xdd   : > { %v339_v32 = vpop.f32.mrf.mxu1 }
  0xde   : > { %v576_v35 = vpop.f32.mrf.mxu0  ;;  %v340_v42 = vadd.f32 %v339_v32, %v271_v31 }
  0xdf   : > { %v588_v36 = vpop.f32.mrf.mxu1 }
  0xe0   : > { %v274_v37 = vpop.f32.mrf.mxu0 }
  0xe1   : > { %v342_v38 = vpop.f32.mrf.mxu1 }
  0xe2   : > { %v577_v40 = vpop.f32.mrf.mxu0  ;;  %v343_v48 = vadd.f32 %v342_v38, %v274_v37 }
  0xe3   : > { %v589_v41 = vpop.f32.mrf.mxu1 }
  0xec   : > { %v417_v43 = vpop.f32.mrf.mxu0 }
  0xed   : > { %v424_v45 = vadd.f32 %v417_v43, %v340_v42 }
  0xee   : > { %v600_v47 = vpop.f32.mrf.mxu0 }
  0xef   : > { %v433_v49 = vadd.f32 %v546_v44, %v424_v45 }
  0xf0   : > { %v420_v50 = vpop.f32.mrf.mxu0 }
  0xf1   : > { %v447_v51 = vmul.f32 %v629_v46, %v433_v49  ;;  %v425_v52 = vadd.f32 %v420_v50, %v343_v48 }
  0xf2   : > { %v601_v54 = vpop.f32.mrf.mxu0 }
  0xf3   : > { %449 = vst.msk [vmem:[%s170_s21] sm:$0xff] %vm233_vm2, %v447_v51  ;;  %v434_v55 = vadd.f32 %v546_v44, %v425_v52 }
  0xf5   : > { %v448_v56 = vmul.f32 %v631_v53, %v434_v55 }
  0xf7   : > { %450 = vst.msk [vmem:[%s170_s21 + $0x8] sm:$0xff] %vm233_vm2, %v448_v56 }
  0xf8 PF: > { %s13_s12 = sadd.s32 1, %s638_s12  }
  0xf9   : > { %p10_p4 = scmp.ge.s32.totalorder %s13_s12, 4  }
  0xfb   :  { %12 = sbr.rel (!%p10_p4) target bundleno = 1 (0x1), region = 64 }

</bundles_post_ra>
